<compile_context>
chip_gen: v6e
topology: v6e:2x2x1
jax: 0.10.0
libtpu: 0.0.40
codegen_flags: <defaults>
</compile_context>

<pallas_src>
import functools

import jax
import jax.numpy as jnp
from jax.experimental import pallas as pl
from jax.experimental.pallas import tpu as pltpu

_EPS = 1e-12  # F.normalize default eps


def _round_up(x, m):
    return (x + m - 1) // m * m


def _vmem_limit(needed_bytes):
    """Size the VMEM request to the real footprint, capped per generation."""
    try:
        cap = int(pltpu.get_tpu_info().vmem_capacity_bytes) * 7 // 10
    except Exception:
        cap = 48 * 1024 * 1024  # conservative: safely below v7x's 64 MiB/TC
    return int(max(min(needed_bytes, cap), 16 * 1024 * 1024))


# --------------------------- kernels ---------------------------

def _margin_resident_kernel(f_ref, wt_ref, lab_ref, o_ref, *, s, sm):
    # f_ref  : (tn, D)      f32   raw feature tile
    # wt_ref : (D, c_pad)   bf16  column-normalized weight, fully resident
    # lab_ref: (tn, 1)      int32
    # o_ref  : (tn, c_pad)  f32
    f = f_ref[...].astype(jnp.float32)
    # F.normalize(features, dim=1) with s folded into the per-row scale:
    # x * (s * rsqrt(max(sumsq, eps^2)))  ->  MXU emits s*cosine directly.
    inv = jax.lax.rsqrt(
        jnp.maximum(jnp.sum(f * f, axis=1, keepdims=True), _EPS * _EPS))
    f_n = (f * (inv * s)).astype(jnp.bfloat16)
    sc = jax.lax.dot_general(
        f_n, wt_ref[...],
        dimension_numbers=(((1,), (0,)), ((), ())),
        preferred_element_type=jnp.float32)                   # = s * cosine
    col = jax.lax.broadcasted_iota(jnp.int32, sc.shape, 1)
    # s*(cosine - one_hot*m) == where(col==label, s*cosine - s*m, s*cosine)
    o_ref[...] = jnp.where(col == lab_ref[...], sc - sm, sc)


def _margin_tiled_kernel(f_ref, wt_ref, lab_ref, o_ref, fn_ref, *, s, sm):
    # Class-tiled fallback (large C). Normalized bf16 features are cached in a
    # VMEM scratch and reused across the class sweep (class axis "arbitrary").
    j = pl.program_id(1)

    @pl.when(j == 0)
    def _():
        f = f_ref[...].astype(jnp.float32)
        inv = jax.lax.rsqrt(
            jnp.maximum(jnp.sum(f * f, axis=1, keepdims=True), _EPS * _EPS))
        fn_ref[...] = (f * (inv * s)).astype(jnp.bfloat16)

    sc = jax.lax.dot_general(
        fn_ref[...], wt_ref[...],
        dimension_numbers=(((1,), (0,)), ((), ())),
        preferred_element_type=jnp.float32)                   # = s * cosine
    tc = o_ref.shape[1]
    lab_local = lab_ref[...] - j * tc           # shift labels, not the iota
    col = jax.lax.broadcasted_iota(jnp.int32, sc.shape, 1)
    o_ref[...] = jnp.where(col == lab_local, sc - sm, sc)


def _plain_kernel(f_ref, w_ref, o_ref):
    # labels is None branch: plain nn.Linear (no bias), f32 operands to keep
    # raw-logit accuracy (no explicit bf16 downcast).
    o_ref[...] = jax.lax.dot_general(
        f_ref[...], w_ref[...],
        dimension_numbers=(((1,), (0,)), ((), ())),
        preferred_element_type=jnp.float32)


# --------------------------- wrapper ---------------------------

def cosine_margin_product(features, weight, labels=None, *, s=6.0, m=0.2,
                          block_n=512, block_c=512,
                          max_resident_weight_bytes=8 * 1024 * 1024):
    """features: (N, D) f32, weight: (C, D) f32, labels: (N,) int or None."""
    features = jnp.asarray(features, jnp.float32)
    weight = jnp.asarray(weight, jnp.float32)
    n, d = features.shape
    c, d2 = weight.shape
    assert d == d2, "feature dim mismatch"

    # ---- tile geometry: lane-dense class dim, 8-aligned N ----
    tn = min(block_n, _round_up(n, 8))
    n_pad = _round_up(n, tn)

    c128 = _round_up(c, 128)
    resident = (d * c128 * 2) <= max_resident_weight_bytes
    if resident:
        tc = c_pad = c128
    else:
        # Pick tc to minimize class-padding waste (c_pad stays near c128).
        n_ct = pl.cdiv(c128, block_c)
        tc = 128 * pl.cdiv(c128 // 128, n_ct)
        c_pad = _round_up(c128, tc)

    f_pad = jnp.pad(features, ((0, n_pad - n), (0, 0)))

    margin = labels is not None
    if margin:
        # F.normalize(weight, dim=0): per-feature-column norm over the CLASS
        # axis (matches the PyTorch reference). Hoisted here (full reduction
        # over C) and presented pre-transposed as (D, C_pad) bf16.
        # TODO(synk): for inference with a static weight, cache this prep
        # across calls (it is 2-3 extra HBM passes over the weight per call).
        w_norm = jnp.sqrt(jnp.sum(weight * weight, axis=0, keepdims=True))
        w_n = weight / jnp.maximum(w_norm, _EPS)
        w_t = jnp.pad(w_n, ((0, c_pad - c), (0, 0))).T.astype(jnp.bfloat16)
        lab = jnp.asarray(labels, jnp.int32).reshape(-1)
        lab = jnp.pad(lab, (0, n_pad - n), constant_values=-1).reshape(n_pad, 1)
        w_bytes = 2
    else:
        w_t = jnp.pad(weight, ((0, c_pad - c), (0, 0))).T    # (D, C_pad) f32
        w_bytes = 4

    # VMEM budget: double-buffered tiles + bf16 feature scratch + headroom.
    footprint = (2 * (tn * d * 4 + d * tc * w_bytes + tn * tc * 4)
                 + tn * d * 2 + (4 << 20))
    vmem_limit = _vmem_limit(footprint)

    cost = pl.CostEstimate(
        flops=2 * n_pad * d * c_pad,
        transcendentals=n_pad if margin else 0,
        bytes_accessed=n_pad * d * 4 + d * c_pad * w_bytes + n_pad * c_pad * 4)

    if resident:
        grid = (n_pad // tn,)
        semantics = ("parallel",)
        f_spec = pl.BlockSpec((tn, d), lambda i: (i, 0))
        w_spec = pl.BlockSpec((d, c_pad), lambda i: (0, 0))   # fetched once
        o_spec = pl.BlockSpec((tn, c_pad), lambda i: (i, 0))
        scratch = []
        if margin:
            kernel = functools.partial(_margin_resident_kernel,
                                       s=float(s), sm=float(s) * float(m))
            in_specs = [f_spec, w_spec, pl.BlockSpec((tn, 1), lambda i: (i, 0))]
            args = (f_pad, w_t, lab)
        else:
            kernel = _plain_kernel
            in_specs = [f_spec, w_spec]
            args = (f_pad, w_t)
    else:
        grid = (n_pad // tn, c_pad // tc)
        # Class axis "arbitrary" so the normalized-feature scratch is valid
        # across the sequential class sweep; N axis "parallel" for megacore.
        semantics = ("parallel", "arbitrary")
        f_spec = pl.BlockSpec((tn, d), lambda i, j: (i, 0))
        w_spec = pl.BlockSpec((d, tc), lambda i, j: (0, j))
        o_spec = pl.BlockSpec((tn, tc), lambda i, j: (i, j))
        if margin:
            kernel = functools.partial(_margin_tiled_kernel,
                                       s=float(s), sm=float(s) * float(m))
            in_specs = [f_spec, w_spec, pl.BlockSpec((tn, 1), lambda i, j: (i, 0))]
            args = (f_pad, w_t, lab)
            scratch = [pltpu.VMEM((tn, d), jnp.bfloat16)]
        else:
            kernel = _plain_kernel
            in_specs = [f_spec, w_spec]
            args = (f_pad, w_t)
            scratch = []

    out = pl.pallas_call(
        kernel,
        out_shape=jax.ShapeDtypeStruct((n_pad, c_pad), jnp.float32),
        grid=grid,
        in_specs=in_specs,
        out_specs=o_spec,
        scratch_shapes=scratch,
        compiler_params=pltpu.CompilerParams(
            dimension_semantics=semantics,
            vmem_limit_bytes=vmem_limit),
        cost_estimate=cost,
    )(*args)

    return out[:n, :c]


# --------------------------- reference & test ---------------------------

def _reference(features, weight, labels, s, m):
    f = features / jnp.maximum(
        jnp.linalg.norm(features, axis=1, keepdims=True), _EPS)
    w = weight / jnp.maximum(
        jnp.linalg.norm(weight, axis=0, keepdims=True), _EPS)
    cosine = f @ w.T
    one_hot = jax.nn.one_hot(labels, weight.shape[0], dtype=jnp.float32)
    return s * (cosine - one_hot * m)


if __name__ == "__main__":
    S, M = 6.0, 0.2
    key = jax.random.PRNGKey(0)
    k_feat, k_w, k_lab, k_feat2, k_w2, k_lab2 = jax.random.split(key, 6)

    # --- Test 1: margin branch, resident-weight path (the real module shape
    #     family: small class_num). N=8 ROIs, feat_dim=128, class_num=21.
    N, D, C = 8, 128, 21
    features = jax.random.normal(k_feat, (N, D), dtype=jnp.float32)
    # nn.Linear(feat_dim, class_num, bias=False); weight.data.normal_(0, 0.01)
    weight = 0.01 * jax.random.normal(k_w, (C, D), dtype=jnp.float32)
    labels = jax.random.randint(k_lab, (N,), 0, C, dtype=jnp.int32)

    out = jax.block_until_ready(
        cosine_margin_product(features, weight, labels, s=S, m=M))
    ref = _reference(features, weight, labels, S, M)
    assert out.shape == (N, C)
    # bf16 MXU operands with f32 accumulation -> relaxed tolerance vs f32 ref.
    assert jnp.allclose(out, ref, atol=3e-2, rtol=3e-2), "mismatch (resident)"

    # --- Test 2: margin branch, class-tiled fallback path (forced).
    N2, D2, C2 = 16, 128, 300
    features2 = jax.random.normal(k_feat2, (N2, D2), dtype=jnp.float32)
    weight2 = 0.01 * jax.random.normal(k_w2, (C2, D2), dtype=jnp.float32)
    labels2 = jax.random.randint(k_lab2, (N2,), 0, C2, dtype=jnp.int32)
    out2 = jax.block_until_ready(
        cosine_margin_product(features2, weight2, labels2, s=S, m=M,
                              block_c=128, max_resident_weight_bytes=0))
    ref2 = _reference(features2, weight2, labels2, S, M)
    assert out2.shape == (N2, C2)
    assert jnp.allclose(out2, ref2, atol=3e-2, rtol=3e-2), "mismatch (tiled)"

    # --- Test 3: labels=None branch (plain linear score, f32 operands).
    out_plain = jax.block_until_ready(cosine_margin_product(features, weight, None))
    assert out_plain.shape == (N, C)
    assert jnp.allclose(out_plain, features @ weight.T, atol=2e-2, rtol=2e-2)

    print("KERNEL_OK")
</pallas_src>

<mosaic_0001>
module attributes {stable_mosaic.version = 11 : i64} {
  func.func @_margin_resident_kernel(%arg0: i32, %arg1: memref<8x128xf32, #tpu.memory_space<vmem>>, %arg2: memref<128x128xbf16, #tpu.memory_space<vmem>>, %arg3: memref<8x1xi32, #tpu.memory_space<vmem>>, %arg4: memref<8x128xf32, #tpu.memory_space<vmem>>) attributes {dimension_semantics = [#tpu.dimension_semantics<parallel>], iteration_bounds = array<i64: 1>, scalar_prefetch = 0 : i64, scratch_operands = 0 : i64, tpu.core_type = #tpu.core_type<tc>, window_params = [{transform_indices = @transform_0, window_bounds = array<i64: 8, 128>}, {pipeline_mode = #tpu.pipeline_mode<synchronous>, transform_indices = @transform_1, window_bounds = array<i64: 128, 128>}, {transform_indices = @transform_2, window_bounds = array<i64: 8, 1>}, {transform_indices = @transform_3, window_bounds = array<i64: 8, 128>}]} {
    %c0 = arith.constant 0 : index
    %c0_0 = arith.constant 0 : index
    %0 = vector.load %arg1[%c0, %c0_0] : memref<8x128xf32, #tpu.memory_space<vmem>>, vector<8x128xf32>
    %1 = arith.mulf %0, %0 : vector<8x128xf32>
    %cst = arith.constant dense<0.000000e+00> : vector<8xf32>
    %2 = vector.multi_reduction <add>, %1, %cst [1] : vector<8x128xf32> to vector<8xf32>
    %3 = vector.shape_cast %2 : vector<8xf32> to vector<8x1xf32>
    %cst_1 = arith.constant 1.000000e-24 : f32
    %4 = vector.broadcast %cst_1 : f32 to vector<8x1xf32>
    %5 = arith.maximumf %3, %4 : vector<8x1xf32>
    %6 = math.rsqrt %5 : vector<8x1xf32>
    %cst_2 = arith.constant 6.000000e+00 : f32
    %7 = vector.broadcast %cst_2 : f32 to vector<8x1xf32>
    %8 = arith.mulf %6, %7 : vector<8x1xf32>
    %9 = vector.broadcast %8 : vector<8x1xf32> to vector<8x128xf32>
    %10 = arith.mulf %0, %9 : vector<8x128xf32>
    %11 = arith.truncf %10 : vector<8x128xf32> to vector<8x128xbf16>
    %c0_3 = arith.constant 0 : index
    %c0_4 = arith.constant 0 : index
    %12 = vector.load %arg2[%c0_3, %c0_4] : memref<128x128xbf16, #tpu.memory_space<vmem>>, vector<128x128xbf16>
    %cst_5 = arith.constant dense<0.000000e+00> : vector<8x128xf32>
    %13 = tpu.matmul %11, %12, %cst_5 {dimension_numbers = #tpu.dot_dimension_numbers<[1], [0], [0], [1], [0, 0, 1, 1], [], []>} : vector<8x128xbf16>, vector<128x128xbf16>, vector<8x128xf32> -> vector<8x128xf32>
    %14 = tpu.iota {dimensions = array<i32: 1>} : vector<8x128xi32>
    %c0_6 = arith.constant 0 : index
    %c0_7 = arith.constant 0 : index
    %15 = vector.load %arg3[%c0_6, %c0_7] : memref<8x1xi32, #tpu.memory_space<vmem>>, vector<8x1xi32>
    %16 = vector.broadcast %15 : vector<8x1xi32> to vector<8x128xi32>
    %17 = arith.cmpi eq, %14, %16 : vector<8x128xi32>
    %cst_8 = arith.constant 1.200000e+00 : f32
    %18 = vector.broadcast %cst_8 : f32 to vector<8x128xf32>
    %19 = arith.subf %13, %18 : vector<8x128xf32>
    %20 = arith.select %17, %19, %13 : vector<8x128xi1>, vector<8x128xf32>
    %c0_9 = arith.constant 0 : index
    %c0_10 = arith.constant 0 : index
    %21 = vector.load %arg4[%c0_9, %c0_10] : memref<8x128xf32, #tpu.memory_space<vmem>>, vector<8x128xf32>
    tpu.vector_store %arg4[%c0_9, %c0_10], %20 {strides = array<i32>} : memref<8x128xf32, #tpu.memory_space<vmem>>, vector<8x128xf32>,
    return
  }
  func.func @transform_0(%arg0: i32) -> (i32, i32) {
    %c0_i32 = arith.constant 0 : i32
    %c0_i32_0 = arith.constant 0 : i32
    return %arg0, %c0_i32 : i32, i32
  }
  func.func @transform_1(%arg0: i32) -> (i32, i32) {
    %c0_i32 = arith.constant 0 : i32
    %c0_i32_0 = arith.constant 0 : i32
    %c0_i32_1 = arith.constant 0 : i32
    return %c0_i32, %c0_i32_0 : i32, i32
  }
  func.func @transform_2(%arg0: i32) -> (i32, i32) {
    %c0_i32 = arith.constant 0 : i32
    %c0_i32_0 = arith.constant 0 : i32
    return %arg0, %c0_i32 : i32, i32
  }
  func.func @transform_3(%arg0: i32) -> (i32, i32) {
    %c0_i32 = arith.constant 0 : i32
    %c0_i32_0 = arith.constant 0 : i32
    return %arg0, %c0_i32 : i32, i32
  }
}

</mosaic_0001>

<bundles_post_ra>
// kernel: tpu_custom_call.1
= control target key start
LH: loop header
LB: loop body
LE: loop exit
PB: predicated region body
PF: predicated region fallthrough
CT: control target
= control target key end

     0   :  { %8 = vsyncpa [#allocation3], 0  ;;  %s307_s0 = inlined_call_operand.vmem [shape: f32[8,128], index: 0, kind: input, shape index: {}]   ;;  %s308_s1 = inlined_call_operand.hbm [shape: bf16[128,128], index: 1, kind: input, shape index: {}]   ;;  %s309_s2 = inlined_call_operand.vmem [shape: s32[8,1], index: 2, kind: input, shape index: {}]   ;;  %s310_s3 = inlined_call_operand.hbm [shape: f32[8,128], index: 3, kind: output, shape index: {}]  }
   0x1   :  { %9 = vsyncpa [#allocation4], 0  ;;  %s268_s12 = smov [#allocation2]  }
   0x2   :  { %s17_s13 = sshll.u32 %s268_s12, 4  ;;  %s18_s13 = int_to_ptr.vmem [resolvable:$true] %s17_s13 }
   0x3   :  { %s232_s14 = scalar_lea.vmem %s18_s13, 1024  ;;  %p237_p1 = scmp.lt.s32.totalorder %s18_s13, %s18_s13 }
   0x4   :  { %p233_p0 = scmp.ne.s32.totalorder %s18_s13, %s232_s14  ;;  %p238_p2 = scmp.lt.s32.totalorder %s232_s14, %s232_s14 }
   0x6   :  { %p239_p3 = por %p238_p2, %p237_p1 }
   0x8   :  { %p240_p4 = pnand %p239_p3, %p233_p0 }
   0xa   :  { %243 = shalt.err (!%p240_p4)
}
   0xb   :  { %s269_s15 = smov 64   ;;  %s270_s16 = smov 4  }
   0xc   :  { %23 = dma.hbm_to_vmem [thread:$0]  %s308_s1, 1024, %s18_s13, [#allocation3], %s269_s15, %s269_s15, %s270_s16  }
   0xd   :  { %264 = dma.done.wait [#allocation3], 1024  }
   0xe   :  { %265 = vsyncadd [#allocation3], 4294966272  ;;  %v271_v0 = vmov 0.0   ;;  %v30_v1 = vld [vmem:[%s307_s0] sm:$0xff]  ;;  %v214_v3 = vld [vmem:[#allocation2 + $0x38] sm:$0xff]   ;;  %vm272_vm0 = vmmov 0   ;;  %v143_v19 = vlaneseq }
   0xf   :  { %186 = vmatprep.subr.bf16.mxu0 %v271_v0  ;;  %v31_v2 = vmul.f32 %v30_v1, %v30_v1  ;;  %v215_v4 = vld [vmem:[#allocation2 + $0x30] sm:$0xff]   ;;  %v216_v5 = vld [vmem:[#allocation2 + $0x28] sm:$0xff]   ;;  %v217_v6 = vld [vmem:[#allocation2 + $0x20] sm:$0xff]   ;;  %202 = vmatprep.mubr.msk.bf16.mxu0 %vm272_vm0, %v271_v0  ;;  %v273_v12 = vmov 0   ;;  %s274_s21 = smov [#allocation5]  }
  0x10   :  { %187 = vmatpush3.bf16.msra.mxu0 %v214_v3  ;;  %v218_v7 = vld [vmem:[#allocation2 + $0x18] sm:$0xff]   ;;  %v219_v8 = vld [vmem:[#allocation2 + $0x10] sm:$0xff]   ;;  %v220_v9 = vld [vmem:[#allocation2 + $0x8] sm:$0xff]   ;;  %213 = vset.pattern.permute.xlu0 %v273_v12  ;;  %v144_v20 = vand.u32 127, %v143_v19  ;;  %s159_s22 = sshll.u32 %s274_s21, 4  ;;  %s160_s22 = int_to_ptr.vmem [resolvable:$true] %s159_s22 }
  0x11   :  { %32 = vadd.xlane.f32.xlu0 %v31_v2  ;;  %188 = vmatprep.subr.bf16.mxu0 %v271_v0  ;;  %v221_v10 = vld [vmem:[#allocation2] sm:$0xff]   ;;  %p249_p6 = scmp.lt.s32.totalorder %s160_s22, %s160_s22 }
  0x12   :  { %v145_v11 = vld [vmem:[%s309_s2] sm:$0xff]  ;;  %s244_s2 = scalar_lea.vmem %s160_s22, 128 }
  0x13   :  { %p245_p5 = scmp.ne.s32.totalorder %s160_s22, %s244_s2  ;;  %p250_p7 = scmp.lt.s32.totalorder %s244_s2, %s244_s2 }
  0x14   :  { %189 = vmatpush3.bf16.msra.mxu0 %v215_v4 }
  0x15   :  { %190 = vmatprep.subr.bf16.mxu0 %v271_v0  ;;  %p251_p8 = por %p250_p7, %p249_p6 }
  0x17   :  { %p252_p9 = pnand %p251_p8, %p245_p5 }
  0x18   :  { %191 = vmatpush3.bf16.msra.mxu0 %v216_v5 }
  0x19   :  { %192 = vmatprep.subr.bf16.mxu0 %v271_v0 }
  0x1c   :  { %193 = vmatpush3.bf16.msra.mxu0 %v217_v6 }
  0x1d   :  { %194 = vmatprep.subr.bf16.mxu0 %v271_v0 }
  0x20   :  { %195 = vmatpush3.bf16.msra.mxu0 %v218_v7 }
  0x21   :  { %196 = vmatprep.subr.bf16.mxu0 %v271_v0 }
  0x24   :  { %197 = vmatpush3.bf16.msra.mxu0 %v219_v8 }
  0x25   :  { %198 = vmatprep.subr.bf16.mxu0 %v271_v0 }
  0x27   :  { %147 = vperm.xlu0 %213, %v145_v11  }
  0x28   :  { %199 = vmatpush3.bf16.msra.mxu0 %v220_v9 }
  0x29   :  { %200 = vmatprep.subr.bf16.mxu0 %v271_v0 }
  0x2c   :  { %201 = vmatpush3.bf16.msra.mxu0 %v221_v10 }
  0x9a   :  { %v33_v13 = vpop.xlane.xlu0 %32 }
  0x9b   :  { %v34_v14 = vmax.f32 %v33_v13, 1e-24 }
  0x9d   :  { %222 = vrsqrt.f32 %v34_v14 }
  0xa2   :  { %v148_v21 = vpop.permute.xlu0 %147 }
  0xa3   :  { %vm149_vm1 = vcmp.eq.s32.totalorder %v144_v20, %v148_v21 }
  0xaa   :  { %v223_v15 = vpop.eup %222 }
  0xab   :  { %v36_v16 = vmul.f32 6.0, %v223_v15 }
  0xad   :  { %v37_v17 = vmul.f32 %v36_v16, %v30_v1 }
  0xaf   :  { %v38_v18 = vpack.c.bf16 %v37_v17, %v37_v17 }
  0xb1   :  { %203 = vmatmul.mubr.bf16.vlgmr.msra.gmra.mxu0 %v38_v18 }
 0x171   :  { %v137_v22 = vpop.f32.mrf.mxu0 }
 0x172   :  { %v176_v23 = vadd.f32 -1.2, %v137_v22 }
 0x173   :  { %v204_v24 = vpop.f32.mrf.mxu0 }
 0x174   :  { %v151_v25 = vsel %vm149_vm1, %v176_v23, %v137_v22 }
 0x175   :  { %v140_v26 = vpop.f32.mrf.mxu0  ;;  %152 = vst [vmem:[#allocation5] sm:$0xff] %v151_v25 }
 0x176   :  { %255 = shalt.err (!%p252_p9)
}
 0x177   :  { %162 = dma.vmem_to_hbm [thread:$0]  %s160_s22, 128, %s310_s3, [#allocation4]   ;;  %v205_v27 = vpop.f32.mrf.mxu0 }
 0x178   :  { %266 = dma.done.wait [#allocation4], 128  }
 0x179   :  { %267 = vsyncadd [#allocation4], 4294967168 }
 0x17a   :  { %166 = vsyncpa [#allocation3], 1 }
 0x17b   :  { %167 = vsyncpa [#allocation4], 1 }

</bundles_post_ra>
